<compile_context>
chip_gen: v7x
topology: tpu7x:2x2x1
jax: 0.10.0
libtpu: 0.0.40
codegen_flags: <defaults>
</compile_context>

<pallas_src>
import math

import jax
import jax.numpy as jnp
from jax.experimental import pallas as pl
from jax.experimental.pallas import tpu as pltpu

LANE = 128
VMEM_LIMIT = 32 * 1024 * 1024  # explicit, conservative scoped-VMEM budget


def _round_up(x, m):
    return (x + m - 1) // m * m


def _pick_tile(n, candidates):
    for c in candidates:
        if n % c == 0:
            return c
    return n


# ---------------------------------------------------------------------------
# Kernels
# ---------------------------------------------------------------------------
def _xw_kernel(x_ref, w_ref, o_ref):
    """XW = X @ W, stored bf16 (grid-invariant precompute, tiled over rows)."""
    o_ref[...] = jnp.dot(
        x_ref[...], w_ref[...], preferred_element_type=jnp.float32
    ).astype(o_ref.dtype)


def _agg_xw_kernel(a_ref, xw_ref, b_ref, o_ref, acc_ref):
    """out = relu(A_hat @ XW + b), K-tiled over A_hat columns (F >= H path)."""
    @pl.when(pl.program_id(1) == 0)
    def _init():
        acc_ref[...] = jnp.zeros_like(acc_ref)

    acc_ref[...] += jnp.dot(
        a_ref[...], xw_ref[...], preferred_element_type=jnp.float32
    )

    @pl.when(pl.program_id(1) == pl.num_programs(1) - 1)
    def _finalize():
        o_ref[...] = jnp.maximum(acc_ref[...] + b_ref[...], 0.0).astype(o_ref.dtype)


def _agg_first_kernel(a_ref, x_ref, w_ref, b_ref, o_ref, acc_ref):
    """out = relu((A_hat @ X) @ W + b), K-tiled aggregation (F < H path)."""
    @pl.when(pl.program_id(1) == 0)
    def _init():
        acc_ref[...] = jnp.zeros_like(acc_ref)

    acc_ref[...] += jnp.dot(
        a_ref[...], x_ref[...], preferred_element_type=jnp.float32
    )

    @pl.when(pl.program_id(1) == pl.num_programs(1) - 1)
    def _finalize():
        h = jnp.dot(
            acc_ref[...].astype(w_ref.dtype), w_ref[...],
            preferred_element_type=jnp.float32,
        ) + b_ref[...]
        o_ref[...] = jnp.maximum(h, 0.0).astype(o_ref.dtype)


# ---------------------------------------------------------------------------
# Host-side wrapper
# ---------------------------------------------------------------------------
def _prepare(a_hat, x, w, b):
    n, f = x.shape
    h = w.shape[1]
    n_pad = _round_up(n, LANE)
    h_pad = _round_up(h, LANE)
    a_p = jnp.pad(a_hat, ((0, n_pad - n), (0, n_pad - n))).astype(jnp.bfloat16)
    x_p = jnp.pad(x, ((0, n_pad - n), (0, 0))).astype(jnp.bfloat16)
    w_p = jnp.pad(w, ((0, 0), (0, h_pad - h))).astype(jnp.bfloat16)
    b_p = jnp.pad(b.reshape(1, -1).astype(jnp.float32), ((0, 0), (0, h_pad - h)))
    return a_p, x_p, w_p, b_p, n_pad, h_pad


def dgi_forward(a_hat, x, w, b):
    """relu(A_hat @ (X @ W) + b) -- PyG GCNConv + ReLU, dense-adjacency form.

    a_hat: [N, N] normalized adjacency, x: [N, F], w: [F, H], b: [H].
    Returns float32 [N, H].
    """
    n, f = x.shape
    h = w.shape[1]
    a_p, x_p, w_p, b_p, n_pad, h_pad = _prepare(a_hat, x, w, b)

    tn = _pick_tile(n_pad, (256, 128))       # row tile: fill MXU sublanes
    tk = _pick_tile(n_pad, (512, 256, 128))  # reduction tile over A_hat columns
    grid = (n_pad // tn, n_pad // tk)

    cparams = pltpu.CompilerParams(
        dimension_semantics=("parallel", "arbitrary"),
        vmem_limit_bytes=VMEM_LIMIT,
    )
    vmem_full = pl.BlockSpec(memory_space=pltpu.MemorySpace.VMEM)  # single-buffered

    if h_pad <= f:
        # Realistic GCN shapes (input_dim >> hidden_dim): precompute XW once.
        xw = pl.pallas_call(
            _xw_kernel,
            out_shape=jax.ShapeDtypeStruct((n_pad, h_pad), jnp.bfloat16),
            grid=(n_pad // tn,),
            in_specs=[pl.BlockSpec((tn, f), lambda i: (i, 0)), vmem_full],
            out_specs=pl.BlockSpec((tn, h_pad), lambda i: (i, 0)),
            compiler_params=pltpu.CompilerParams(
                dimension_semantics=("parallel",),
                vmem_limit_bytes=VMEM_LIMIT,
            ),
            cost_estimate=pl.CostEstimate(
                flops=2 * n_pad * f * h_pad,
                transcendentals=0,
                bytes_accessed=2 * (n_pad * f + f * h_pad + n_pad * h_pad),
            ),
        )(x_p, w_p)

        out_p = pl.pallas_call(
            _agg_xw_kernel,
            out_shape=jax.ShapeDtypeStruct((n_pad, h_pad), jnp.float32),
            grid=grid,
            in_specs=[
                pl.BlockSpec((tn, tk), lambda i, k: (i, k)),      # A_hat tile
                pl.BlockSpec((tk, h_pad), lambda i, k: (k, 0)),   # XW K-slab
                vmem_full,                                        # bias (resident)
            ],
            out_specs=pl.BlockSpec((tn, h_pad), lambda i, k: (i, 0)),
            scratch_shapes=[pltpu.VMEM((tn, h_pad), jnp.float32)],
            compiler_params=cparams,
            cost_estimate=pl.CostEstimate(
                flops=2 * n_pad * n_pad * h_pad,
                transcendentals=0,
                bytes_accessed=2 * n_pad * n_pad
                + 2 * n_pad * h_pad
                + 4 * n_pad * h_pad,
            ),
        )(a_p, xw, b_p)
    else:
        # Narrow-feature case (F < H): aggregate first, transform in the epilogue.
        out_p = pl.pallas_call(
            _agg_first_kernel,
            out_shape=jax.ShapeDtypeStruct((n_pad, h_pad), jnp.float32),
            grid=grid,
            in_specs=[
                pl.BlockSpec((tn, tk), lambda i, k: (i, k)),  # A_hat tile
                pl.BlockSpec((tk, f), lambda i, k: (k, 0)),   # X K-slab
                vmem_full,                                    # W (resident)
                vmem_full,                                    # bias (resident)
            ],
            out_specs=pl.BlockSpec((tn, h_pad), lambda i, k: (i, 0)),
            scratch_shapes=[pltpu.VMEM((tn, f), jnp.float32)],
            compiler_params=cparams,
            cost_estimate=pl.CostEstimate(
                flops=2 * n_pad * n_pad * f + 2 * n_pad * f * h_pad,
                transcendentals=0,
                bytes_accessed=2 * n_pad * n_pad
                + 2 * n_pad * f
                + 2 * f * h_pad
                + 4 * n_pad * h_pad,
            ),
        )(a_p, x_p, w_p, b_p)

    return out_p[:n, :h]


def dgi_reference(a_hat, x, w, b):
    """Pure-JAX reference following the exact same bf16/f32 math path."""
    n, f = x.shape
    h = w.shape[1]
    a_p, x_p, w_p, b_p, _, h_pad = _prepare(a_hat, x, w, b)
    if h_pad <= f:
        xw = jnp.dot(x_p, w_p, preferred_element_type=jnp.float32).astype(jnp.bfloat16)
        out = jnp.dot(a_p, xw, preferred_element_type=jnp.float32) + b_p
    else:
        ax = jnp.dot(a_p, x_p, preferred_element_type=jnp.float32).astype(jnp.bfloat16)
        out = jnp.dot(ax, w_p, preferred_element_type=jnp.float32) + b_p
    return jnp.maximum(out, 0.0)[:n, :h]


# ---------------------------------------------------------------------------
# Graph / parameter glue (plain JAX)
# ---------------------------------------------------------------------------
def build_gcn_norm_adj(edge_index, num_nodes):
    """Dense D^{-1/2} (A + I) D^{-1/2}, matching PyG gcn_norm (source->target)."""
    src = edge_index[0]
    dst = edge_index[1]
    loop = jnp.arange(num_nodes, dtype=edge_index.dtype)
    src = jnp.concatenate([src, loop])
    dst = jnp.concatenate([dst, loop])
    # adj[i, j] = number of edges j -> i (self-loops included)
    adj = jnp.zeros((num_nodes, num_nodes), jnp.float32).at[dst, src].add(1.0)
    deg = jnp.sum(adj, axis=1)
    dis = jnp.where(deg > 0.0, 1.0 / jnp.sqrt(deg), 0.0)
    return dis[:, None] * adj * dis[None, :]


def init_params(key, input_dim, hidden_dim):
    """Deterministic parameter init mirroring the PyTorch module shapes."""
    k_gcn, k_disc = jax.random.split(key)
    # GCNConv lin weight: glorot uniform, torch shape [hidden, input]; kept
    # pre-transposed as [input, hidden] (glorot bound is symmetric).
    bound = math.sqrt(6.0 / (input_dim + hidden_dim))
    w_gcn = jax.random.uniform(
        k_gcn, (input_dim, hidden_dim), jnp.float32, minval=-bound, maxval=bound
    )
    b_gcn = jnp.zeros((hidden_dim,), jnp.float32)  # PyG zeros-initialized bias
    # Discriminator weight [hidden, hidden] (xavier_uniform) — unused by forward().
    d_bound = math.sqrt(6.0 / (hidden_dim + hidden_dim))
    w_disc = jax.random.uniform(
        k_disc, (hidden_dim, hidden_dim), jnp.float32, minval=-d_bound, maxval=d_bound
    )
    return w_gcn, b_gcn, w_disc


if __name__ == "__main__":
    key = jax.random.PRNGKey(0)

    # Two cases to exercise both matmul orders and the row-padding path:
    #   (num_nodes, input_dim, hidden_dim, num_edges)
    test_cases = [
        (64, 16, 32, 128),    # F <  H_pad -> aggregate-first fused kernel
        (100, 256, 32, 300),  # F >= H_pad -> precomputed X@W + aggregation kernel
    ]

    for idx, (num_nodes, input_dim, hidden_dim, num_edges) in enumerate(test_cases):
        k_x, k_e, k_p, key = jax.random.split(key, 4)
        x = jax.random.normal(k_x, (num_nodes, input_dim), jnp.float32)
        edge_index = jax.random.randint(k_e, (2, num_edges), 0, num_nodes, jnp.int32)
        w_gcn, b_gcn, _w_disc = init_params(k_p, input_dim, hidden_dim)
        a_hat = build_gcn_norm_adj(edge_index, num_nodes)

        out = jax.block_until_ready(dgi_forward(a_hat, x, w_gcn, b_gcn))
        ref = dgi_reference(a_hat, x, w_gcn, b_gcn)

        assert out.shape == (num_nodes, hidden_dim)
        max_err = float(jnp.max(jnp.abs(out - ref)))
        assert jnp.allclose(out, ref, atol=1e-3, rtol=1e-3), (
            f"case {idx}: max abs err {max_err}"
        )

    # TODO(synk): compute_loss (readout + discriminator + BCE) and the sparse
    # CSR gather-aggregation variant (for graphs where dense N^2 A_hat is too
    # large) are training/scale concerns outside DGIModel.forward.
    print("KERNEL_OK")
</pallas_src>

<mosaic_0001>
module attributes {stable_mosaic.version = 11 : i64} {
  func.func @_agg_first_kernel(%arg0: i32, %arg1: i32, %arg2: memref<128x128xbf16, #tpu.memory_space<vmem>>, %arg3: memref<128x16xbf16, #tpu.memory_space<vmem>>, %arg4: memref<16x128xbf16, #tpu.memory_space<vmem>>, %arg5: memref<1x128xf32, #tpu.memory_space<vmem>>, %arg6: memref<128x128xf32, #tpu.memory_space<vmem>>, %arg7: memref<128x16xf32, #tpu.memory_space<vmem>>) attributes {dimension_semantics = [#tpu.dimension_semantics<parallel>, #tpu.dimension_semantics<arbitrary>], iteration_bounds = array<i64: 1, 1>, scalar_prefetch = 0 : i64, scratch_operands = 1 : i64, tpu.core_type = #tpu.core_type<tc>, window_params = [{transform_indices = @transform_0, window_bounds = array<i64: 128, 128>}, {transform_indices = @transform_1, window_bounds = array<i64: 128, 16>}, {pipeline_mode = #tpu.pipeline_mode<synchronous>, transform_indices = @transform_2, window_bounds = array<i64: 16, 128>}, {pipeline_mode = #tpu.pipeline_mode<synchronous>, transform_indices = @transform_3, window_bounds = array<i64: 1, 128>}, {transform_indices = @transform_4, window_bounds = array<i64: 128, 128>}]} {
    %c0_i32 = arith.constant 0 : i32
    %0 = arith.cmpi eq, %arg1, %c0_i32 : i32
    %1 = arith.extui %0 : i1 to i32
    %c0_i32_0 = arith.constant 0 : i32
    %2 = arith.cmpi ne, %1, %c0_i32_0 : i32
    scf.if %2 {
      %cst_10 = arith.constant 0.000000e+00 : f32
      %12 = vector.broadcast %cst_10 : f32 to vector<128x16xf32>
      %c0_11 = arith.constant 0 : index
      %c0_12 = arith.constant 0 : index
      %13 = vector.load %arg7[%c0_11, %c0_12] : memref<128x16xf32, #tpu.memory_space<vmem>>, vector<128x16xf32>
      tpu.vector_store %arg7[%c0_11, %c0_12], %12 {strides = array<i32>} : memref<128x16xf32, #tpu.memory_space<vmem>>, vector<128x16xf32>,
    } else {
    }
    %c0 = arith.constant 0 : index
    %c0_1 = arith.constant 0 : index
    %3 = vector.load %arg7[%c0, %c0_1] : memref<128x16xf32, #tpu.memory_space<vmem>>, vector<128x16xf32>
    %c0_2 = arith.constant 0 : index
    %c0_3 = arith.constant 0 : index
    %4 = vector.load %arg2[%c0_2, %c0_3] : memref<128x128xbf16, #tpu.memory_space<vmem>>, vector<128x128xbf16>
    %c0_4 = arith.constant 0 : index
    %c0_5 = arith.constant 0 : index
    %5 = vector.load %arg3[%c0_4, %c0_5] : memref<128x16xbf16, #tpu.memory_space<vmem>>, vector<128x16xbf16>
    %cst = arith.constant dense<0.000000e+00> : vector<128x16xf32>
    %6 = tpu.matmul %4, %5, %cst {dimension_numbers = #tpu.dot_dimension_numbers<[1], [0], [0], [1], [0, 0, 1, 1], [], []>} : vector<128x128xbf16>, vector<128x16xbf16>, vector<128x16xf32> -> vector<128x16xf32>
    %7 = arith.addf %3, %6 : vector<128x16xf32>
    %c0_6 = arith.constant 0 : index
    %c0_7 = arith.constant 0 : index
    %8 = vector.load %arg7[%c0_6, %c0_7] : memref<128x16xf32, #tpu.memory_space<vmem>>, vector<128x16xf32>
    tpu.vector_store %arg7[%c0_6, %c0_7], %7 {strides = array<i32>} : memref<128x16xf32, #tpu.memory_space<vmem>>, vector<128x16xf32>,
    %c0_i32_8 = arith.constant 0 : i32
    %9 = arith.cmpi eq, %arg1, %c0_i32_8 : i32
    %10 = arith.extui %9 : i1 to i32
    %c0_i32_9 = arith.constant 0 : i32
    %11 = arith.cmpi ne, %10, %c0_i32_9 : i32
    scf.if %11 {
      %c0_10 = arith.constant 0 : index
      %c0_11 = arith.constant 0 : index
      %12 = vector.load %arg7[%c0_10, %c0_11] : memref<128x16xf32, #tpu.memory_space<vmem>>, vector<128x16xf32>
      %13 = arith.truncf %12 : vector<128x16xf32> to vector<128x16xbf16>
      %c0_12 = arith.constant 0 : index
      %c0_13 = arith.constant 0 : index
      %14 = vector.load %arg4[%c0_12, %c0_13] : memref<16x128xbf16, #tpu.memory_space<vmem>>, vector<16x128xbf16>
      %cst_14 = arith.constant dense<0.000000e+00> : vector<128x128xf32>
      %15 = tpu.matmul %13, %14, %cst_14 {dimension_numbers = #tpu.dot_dimension_numbers<[1], [0], [0], [1], [0, 0, 1, 1], [], []>} : vector<128x16xbf16>, vector<16x128xbf16>, vector<128x128xf32> -> vector<128x128xf32>
      %c0_15 = arith.constant 0 : index
      %c0_16 = arith.constant 0 : index
      %16 = vector.load %arg5[%c0_15, %c0_16] : memref<1x128xf32, #tpu.memory_space<vmem>>, vector<1x128xf32>
      %17 = vector.broadcast %16 : vector<1x128xf32> to vector<128x128xf32>
      %18 = arith.addf %15, %17 : vector<128x128xf32>
      %cst_17 = arith.constant 0.000000e+00 : f32
      %19 = vector.broadcast %cst_17 : f32 to vector<128x128xf32>
      %20 = arith.maximumf %18, %19 : vector<128x128xf32>
      %c0_18 = arith.constant 0 : index
      %c0_19 = arith.constant 0 : index
      %21 = vector.load %arg6[%c0_18, %c0_19] : memref<128x128xf32, #tpu.memory_space<vmem>>, vector<128x128xf32>
      tpu.vector_store %arg6[%c0_18, %c0_19], %20 {strides = array<i32>} : memref<128x128xf32, #tpu.memory_space<vmem>>, vector<128x128xf32>,
    } else {
    }
    return
  }
  func.func @transform_0(%arg0: i32, %arg1: i32) -> (i32, i32) {
    %c0_i32 = arith.constant 0 : i32
    return %arg0, %arg1 : i32, i32
  }
  func.func @transform_1(%arg0: i32, %arg1: i32) -> (i32, i32) {
    %c0_i32 = arith.constant 0 : i32
    %c0_i32_0 = arith.constant 0 : i32
    return %arg1, %c0_i32 : i32, i32
  }
  func.func @transform_2(%arg0: i32, %arg1: i32) -> (i32, i32) {
    %c0_i32 = arith.constant 0 : i32
    %c0_i32_0 = arith.constant 0 : i32
    %c0_i32_1 = arith.constant 0 : i32
    return %c0_i32, %c0_i32_0 : i32, i32
  }
  func.func @transform_3(%arg0: i32, %arg1: i32) -> (i32, i32) {
    %c0_i32 = arith.constant 0 : i32
    %c0_i32_0 = arith.constant 0 : i32
    %c0_i32_1 = arith.constant 0 : i32
    return %c0_i32, %c0_i32_0 : i32, i32
  }
  func.func @transform_4(%arg0: i32, %arg1: i32) -> (i32, i32) {
    %c0_i32 = arith.constant 0 : i32
    %c0_i32_0 = arith.constant 0 : i32
    return %arg0, %c0_i32 : i32, i32
  }
}

</mosaic_0001>

<bundles_post_ra>
// kernel: tpu_custom_call.1
= control target key start
LH: loop header
LB: loop body
LE: loop exit
PB: predicated region body
PF: predicated region fallthrough
CT: control target
= control target key end

     0   :  { %vm23_vm0 = vcmask 130048   ;;  %v671_v2 = vmov 0.0   ;;  %s806_s0 = inlined_call_operand.vmem [shape: bf16[128,128], index: 0, kind: input, shape index: {}]   ;;  %s807_s1 = inlined_call_operand.vmem [shape: bf16[128,16], index: 1, kind: input, shape index: {}]   ;;  %s808_s2 = inlined_call_operand.vmem [shape: bf16[16,128], index: 2, kind: input, shape index: {}]   ;;  %s809_s3 = inlined_call_operand.vmem [shape: f32[1,128], index: 3, kind: input, shape index: {}]   ;;  %s810_s4 = inlined_call_operand.hbm [shape: f32[128,128], index: 4, kind: output, shape index: {}]  }
   0x1   :  { %v630_v0 = vld [vmem:[%s807_s1] sm:$0xff]   ;;  %v631_v1 = vld [vmem:[%s807_s1 + $0x8] sm:$0xff]   ;;  %26 = vst.msk [vmem:[#allocation2 + $0x10] sm:$0xff] %vm23_vm0, %v671_v2  ;;  %24 = vst.msk [vmem:[#allocation2] sm:$0xff] %vm23_vm0, %v671_v2 }
   0x2   :  { %576 = vmatprep.subr.bf16.mxu0 %v630_v0  ;;  %25 = vst.msk [vmem:[#allocation2 + $0x8] sm:$0xff] %vm23_vm0, %v671_v2  ;;  %27 = vst.msk [vmem:[#allocation2 + $0x18] sm:$0xff] %vm23_vm0, %v671_v2  ;;  %v632_v3 = vld [vmem:[%s807_s1 + $0x10] sm:$0xff]   ;;  %v633_v4 = vld [vmem:[%s807_s1 + $0x18] sm:$0xff]  }
   0x3   :  { %28 = vst.msk [vmem:[#allocation2 + $0x20] sm:$0xff] %vm23_vm0, %v671_v2  ;;  %29 = vst.msk [vmem:[#allocation2 + $0x28] sm:$0xff] %vm23_vm0, %v671_v2  ;;  %577 = vmatpush3.bf16.msra.mxu0 %v630_v0  ;;  %v638_v5 = vld [vmem:[%s806_s0] sm:$0xff]   ;;  %v635_v7 = vld [vmem:[%s807_s1 + $0x28] sm:$0xff]  }
   0x4   :  { %30 = vst.msk [vmem:[#allocation2 + $0x30] sm:$0xff] %vm23_vm0, %v671_v2  ;;  %31 = vst.msk [vmem:[#allocation2 + $0x38] sm:$0xff] %vm23_vm0, %v671_v2  ;;  %578 = vmatprep.subr.bf16.mxu0 %v631_v1  ;;  %592 = vmatprep.mubr.bf16.mxu0 %v638_v5  ;;  %v634_v6 = vld [vmem:[%s807_s1 + $0x20] sm:$0xff]  }
   0x5   :  { %32 = vst.msk [vmem:[#allocation2 + $0x40] sm:$0xff] %vm23_vm0, %v671_v2  ;;  %33 = vst.msk [vmem:[#allocation2 + $0x48] sm:$0xff] %vm23_vm0, %v671_v2 }
   0x6   :  { %34 = vst.msk [vmem:[#allocation2 + $0x50] sm:$0xff] %vm23_vm0, %v671_v2  ;;  %35 = vst.msk [vmem:[#allocation2 + $0x58] sm:$0xff] %vm23_vm0, %v671_v2 }
   0x7   :  { %36 = vst.msk [vmem:[#allocation2 + $0x60] sm:$0xff] %vm23_vm0, %v671_v2  ;;  %37 = vst.msk [vmem:[#allocation2 + $0x68] sm:$0xff] %vm23_vm0, %v671_v2  ;;  %579 = vmatpush3.bf16.msra.mxu0 %v631_v1 }
   0x8   :  { %38 = vst.msk [vmem:[#allocation2 + $0x70] sm:$0xff] %vm23_vm0, %v671_v2  ;;  %39 = vst.msk [vmem:[#allocation2 + $0x78] sm:$0xff] %vm23_vm0, %v671_v2  ;;  %580 = vmatprep.subr.bf16.mxu0 %v632_v3 }
   0xb   :  { %581 = vmatpush3.bf16.msra.mxu0 %v632_v3 }
   0xc   :  { %582 = vmatprep.subr.bf16.mxu0 %v633_v4 }
   0xf   :  { %583 = vmatpush3.bf16.msra.mxu0 %v633_v4 }
  0x10   :  { %584 = vmatprep.subr.bf16.mxu0 %v634_v6 }
  0x11   :  { %9 = vsyncpa [#allocation4], 0  ;;  %v636_v8 = vld [vmem:[%s807_s1 + $0x30] sm:$0xff]   ;;  %v637_v9 = vld [vmem:[%s807_s1 + $0x38] sm:$0xff]  }
  0x12   :  { %v639_v10 = vld [vmem:[%s806_s0 + $0x8] sm:$0xff]   ;;  %v640_v11 = vld [vmem:[%s806_s0 + $0x10] sm:$0xff]   ;;  %v641_v12 = vld [vmem:[%s806_s0 + $0x18] sm:$0xff]  }
  0x13   :  { %585 = vmatpush3.bf16.msra.mxu0 %v634_v6  ;;  %v642_v13 = vld [vmem:[%s806_s0 + $0x20] sm:$0xff]   ;;  %v643_v14 = vld [vmem:[%s806_s0 + $0x28] sm:$0xff]   ;;  %v644_v15 = vld [vmem:[%s806_s0 + $0x30] sm:$0xff]  }
  0x14   :  { %586 = vmatprep.subr.bf16.mxu0 %v635_v7  ;;  %v645_v16 = vld [vmem:[%s806_s0 + $0x38] sm:$0xff]   ;;  %v646_v17 = vld [vmem:[%s808_s2] sm:$0xff]   ;;  %v42_v18 = vld [vmem:[#allocation2 + $0x10] sm:$0xff] }
  0x15   :  { %608 = vmatprep.subr.bf16.mxu1 %v646_v17  ;;  %v40_v19 = vld [vmem:[#allocation2] sm:$0xff]  ;;  %v43_v21 = vld [vmem:[#allocation2 + $0x18] sm:$0xff]  ;;  %v41_v24 = vld [vmem:[#allocation2 + $0x8] sm:$0xff] }
  0x16   :  { %609 = vmatpush3.bf16.msra.mxu1 %v646_v17  ;;  %v46_v30 = vld [vmem:[#allocation2 + $0x30] sm:$0xff]  ;;  %v44_v31 = vld [vmem:[#allocation2 + $0x20] sm:$0xff]  ;;  %v47_v33 = vld [vmem:[#allocation2 + $0x38] sm:$0xff] }
  0x17   :  { %587 = vmatpush3.bf16.msra.mxu0 %v635_v7  ;;  %v45_v36 = vld [vmem:[#allocation2 + $0x28] sm:$0xff]  ;;  %v50_v45 = vld [vmem:[#allocation2 + $0x50] sm:$0xff]  ;;  %v48_v48 = vld [vmem:[#allocation2 + $0x40] sm:$0xff] }
  0x18   :  { %588 = vmatprep.subr.bf16.mxu0 %v636_v8  ;;  %v51_v51 = vld [vmem:[#allocation2 + $0x58] sm:$0xff]  ;;  %v49_v54 = vld [vmem:[#allocation2 + $0x48] sm:$0xff]  ;;  %v54_v63 = vld [vmem:[#allocation2 + $0x70] sm:$0xff] }
  0x19   :  { %v52_v2 = vld [vmem:[#allocation2 + $0x60] sm:$0xff]  ;;  %v55_v5 = vld [vmem:[#allocation2 + $0x78] sm:$0xff] }
  0x1b   :  { %589 = vmatpush3.bf16.msra.mxu0 %v636_v8  ;;  %v53_v8 = vld [vmem:[#allocation2 + $0x68] sm:$0xff] }
  0x1c   :  { %590 = vmatprep.subr.bf16.mxu0 %v637_v9 }
  0x1f   :  { %591 = vmatpush3.bf16.msra.mxu0 %v637_v9 }
  0x22   :  { %593 = vmatmul.mubr.bf16.vlgmr.msra.gmra.mrb[0].mxu0 %v639_v10 }
  0x23   :  { %596 = vmatprep.mubr.bf16.mxu0 %v640_v11 }
  0x2a   :  { %597 = vmatmul.mubr.bf16.gmra.mrb[4].mxu0 %v641_v12 }
  0x2b   :  { %600 = vmatprep.mubr.bf16.mxu0 %v642_v13 }
  0x32   :  { %601 = vmatmul.mubr.bf16.gmra.mrb[8].mxu0 %v643_v14 }
  0x33   :  { %604 = vmatprep.mubr.bf16.mxu0 %v644_v15 }
  0x3a   :  { %605 = vmatmul.mubr.bf16.gmra.mrb[12].mxu0 %v645_v16 }
  0xf5   :  { %v594_v20 = vpop.f32.mrb[0].mxu0 }
  0xf6   :  { %v283_v22 = vadd.f32 %v594_v20, %v42_v18  ;;  %v218_v23 = vpop.f32.mrb[1].mxu0 }
  0xf7   :  { %v281_v25 = vadd.f32 %v218_v23, %v40_v19  ;;  %v595_v26 = vpop.f32.mrb[2].mxu0 }
  0xf8   :  { %300 = vst.msk [vmem:[#allocation2 + $0x10] sm:$0xff] %vm23_vm0, %v283_v22  ;;  %v284_v27 = vadd.f32 %v595_v26, %v43_v21  ;;  %v221_v28 = vpop.f32.mrb[3].mxu0  ;;  %v541_v26 = vld [vmem:[%s809_s3] ss:$0 sm:$0xff]  ;;  %s672_s3 = smov [#allocation3]  }
  0xf9   :  { %298 = vst.msk [vmem:[#allocation2] sm:$0xff] %vm23_vm0, %v281_v25  ;;  %v282_v29 = vadd.f32 %v221_v28, %v41_v24  ;;  %s514_s22 = sshll.u32 %s672_s3, 4  ;;  %s515_s22 = int_to_ptr.vmem [resolvable:$true] %s514_s22 }
  0xfa   :  { %301 = vst.msk [vmem:[#allocation2 + $0x18] sm:$0xff] %vm23_vm0, %v284_v27  ;;  %s647_s23 = scalar_lea.vmem %s515_s22, 2048  ;;  %p652_p1 = scmp.lt.s32.totalorder %s515_s22, %s515_s22 }
  0xfb   :  { %299 = vst.msk [vmem:[#allocation2 + $0x8] sm:$0xff] %vm23_vm0, %v282_v29  ;;  %p648_p0 = scmp.ne.s32.totalorder %s515_s22, %s647_s23  ;;  %p653_p2 = scmp.lt.s32.totalorder %s647_s23, %s647_s23 }
  0xfd   :  { %v598_v32 = vpop.f32.mrb[4].mxu0  ;;  %p654_p3 = por %p653_p2, %p652_p1 }
  0xfe   :  { %v287_v34 = vadd.f32 %v598_v32, %v46_v30  ;;  %v234_v35 = vpop.f32.mrb[5].mxu0 }
  0xff   :  { %v285_v37 = vadd.f32 %v234_v35, %v44_v31  ;;  %v599_v38 = vpop.f32.mrb[6].mxu0  ;;  %v319_v47 = vld [vmem:[#allocation2 + $0x10] sm:$0xff]  ;;  %p655_p4 = pnand %p654_p3, %p648_p0 }
 0x100   :  { %304 = vst.msk [vmem:[#allocation2 + $0x30] sm:$0xff] %vm23_vm0, %v287_v34  ;;  %v288_v39 = vadd.f32 %v599_v38, %v47_v33  ;;  %v237_v40 = vpop.f32.mrb[7].mxu0  ;;  %v317_v43 = vld [vmem:[#allocation2] sm:$0xff] }
 0x101   :  { %302 = vst.msk [vmem:[#allocation2 + $0x20] sm:$0xff] %vm23_vm0, %v285_v37  ;;  %v286_v41 = vadd.f32 %v237_v40, %v45_v36  ;;  %v320_v42 = vld [vmem:[#allocation2 + $0x18] sm:$0xff] }
 0x102   :  { %305 = vst.msk [vmem:[#allocation2 + $0x38] sm:$0xff] %vm23_vm0, %v288_v39  ;;  %v318_v44 = vld [vmem:[#allocation2 + $0x8] sm:$0xff]  ;;  %v334_v49 = vpack.c.bf16 %v320_v42, %v319_v47 }
 0x103   :  { %303 = vst.msk [vmem:[#allocation2 + $0x28] sm:$0xff] %vm23_vm0, %v286_v41  ;;  %v333_v46 = vpack.c.bf16 %v318_v44, %v317_v43 }
 0x105   :  { %v602_v50 = vpop.f32.mrb[8].mxu0  ;;  %610 = vmatprep.mubr.msk.bf16.mxu1 %vm23_vm0, %v333_v46 }
 0x106   :  { %v291_v52 = vadd.f32 %v602_v50, %v50_v45  ;;  %v250_v53 = vpop.f32.mrb[9].mxu0  ;;  %611 = vmatmul.mubr.msk.bf16.vlgmr.msra.gmra.mrb[0].mxu1 %vm23_vm0, %v334_v49 }
 0x107   :  { %v289_v55 = vadd.f32 %v250_v53, %v48_v48  ;;  %v603_v56 = vpop.f32.mrb[10].mxu0  ;;  %v323_v1 = vld [vmem:[#allocation2 + $0x30] sm:$0xff] }
 0x108   :  { %308 = vst.msk [vmem:[#allocation2 + $0x50] sm:$0xff] %vm23_vm0, %v291_v52  ;;  %v292_v57 = vadd.f32 %v603_v56, %v51_v51  ;;  %v253_v58 = vpop.f32.mrb[11].mxu0  ;;  %v321_v61 = vld [vmem:[#allocation2 + $0x20] sm:$0xff] }
 0x109   :  { %306 = vst.msk [vmem:[#allocation2 + $0x40] sm:$0xff] %vm23_vm0, %v289_v55  ;;  %v290_v59 = vadd.f32 %v253_v58, %v49_v54  ;;  %v324_v60 = vld [vmem:[#allocation2 + $0x38] sm:$0xff] }
 0x10a   :  { %309 = vst.msk [vmem:[#allocation2 + $0x58] sm:$0xff] %vm23_vm0, %v292_v57  ;;  %v322_v62 = vld [vmem:[#allocation2 + $0x28] sm:$0xff]  ;;  %v336_v3 = vpack.c.bf16 %v324_v60, %v323_v1 }
 0x10b   :  { %307 = vst.msk [vmem:[#allocation2 + $0x48] sm:$0xff] %vm23_vm0, %v290_v59  ;;  %v335_v0 = vpack.c.bf16 %v322_v62, %v321_v61 }
 0x10d   :  { %v606_v4 = vpop.f32.mrb[12].mxu0  ;;  %614 = vmatprep.mubr.msk.bf16.mxu1 %vm23_vm0, %v335_v0 }
 0x10e   :  { %v295_v6 = vadd.f32 %v606_v4, %v54_v63  ;;  %v266_v7 = vpop.f32.mrb[13].mxu0  ;;  %615 = vmatmul.mubr.msk.bf16.gmra.mrb[4].mxu1 %vm23_vm0, %v336_v3 }
 0x10f   :  { %v293_v9 = vadd.f32 %v266_v7, %v52_v2  ;;  %v607_v10 = vpop.f32.mrb[14].mxu0  ;;  %v327_v18 = vld [vmem:[#allocation2 + $0x50] sm:$0xff] }
 0x110   :  { %312 = vst.msk [vmem:[#allocation2 + $0x70] sm:$0xff] %vm23_vm0, %v295_v6  ;;  %v296_v11 = vadd.f32 %v607_v10, %v55_v5  ;;  %v269_v12 = vpop.f32.mrb[15].mxu0  ;;  %v325_v15 = vld [vmem:[#allocation2 + $0x40] sm:$0xff] }
 0x111   :  { %310 = vst.msk [vmem:[#allocation2 + $0x60] sm:$0xff] %vm23_vm0, %v293_v9  ;;  %v294_v13 = vadd.f32 %v269_v12, %v53_v8  ;;  %v328_v14 = vld [vmem:[#allocation2 + $0x58] sm:$0xff] }
 0x112   :  { %313 = vst.msk [vmem:[#allocation2 + $0x78] sm:$0xff] %vm23_vm0, %v296_v11  ;;  %v326_v16 = vld [vmem:[#allocation2 + $0x48] sm:$0xff]  ;;  %v338_v19 = vpack.c.bf16 %v328_v14, %v327_v18 }
 0x113   :  { %311 = vst.msk [vmem:[#allocation2 + $0x68] sm:$0xff] %vm23_vm0, %v294_v13  ;;  %v337_v17 = vpack.c.bf16 %v326_v16, %v325_v15 }
 0x115   :  { %618 = vmatprep.mubr.msk.bf16.mxu1 %vm23_vm0, %v337_v17 }
 0x116   :  { %619 = vmatmul.mubr.msk.bf16.gmra.mrb[8].mxu1 %vm23_vm0, %v338_v19 }
 0x117   :  { %v331_v24 = vld [vmem:[#allocation2 + $0x70] sm:$0xff] }
 0x118   :  { %v329_v21 = vld [vmem:[#allocation2 + $0x60] sm:$0xff] }
 0x119   :  { %v332_v20 = vld [vmem:[#allocation2 + $0x78] sm:$0xff] }
 0x11a   :  { %v330_v22 = vld [vmem:[#allocation2 + $0x68] sm:$0xff]  ;;  %v340_v25 = vpack.c.bf16 %v332_v20, %v331_v24 }
 0x11b   :  { %v339_v23 = vpack.c.bf16 %v330_v22, %v329_v21 }
 0x11d   :  { %622 = vmatprep.mubr.msk.bf16.mxu1 %vm23_vm0, %v339_v23 }
 0x11e   :  { %623 = vmatmul.mubr.msk.bf16.gmra.mrb[12].mxu1 %vm23_vm0, %v340_v25 }
 0x1d9   :  { %v612_v27 = vpop.f32.mrb[0].mxu1 }
 0x1da   :  { %v423_v28 = vadd.f32 %v612_v27, %v541_v26  ;;  %v414_v29 = vpop.f32.mrb[1].mxu1 }
 0x1db   :  { %v415_v30 = vadd.f32 %v541_v26, %v414_v29  ;;  %v613_v31 = vpop.f32.mrb[2].mxu1 }
 0x1dc   :  { %v479_v32 = vmax.f32 %v423_v28, 0.0  ;;  %v426_v33 = vadd.f32 %v613_v31, %v541_v26  ;;  %v417_v34 = vpop.f32.mrb[3].mxu1 }
 0x1dd   :  { %v477_v35 = vmax.f32 %v415_v30, 0.0  ;;  %v418_v36 = vadd.f32 %v541_v26, %v417_v34 }
 0x1de   :  { %495 = vst [vmem:[#allocation3 + $0x10] sm:$0xff] %v479_v32  ;;  %v480_v37 = vmax.f32 %v426_v33, 0.0 }
 0x1df   :  { %493 = vst [vmem:[#allocation3] sm:$0xff] %v477_v35  ;;  %v478_v38 = vmax.f32 %v418_v36, 0.0 }
 0x1e0   :  { %496 = vst [vmem:[#allocation3 + $0x18] sm:$0xff] %v480_v37 }
 0x1e1   :  { %494 = vst [vmem:[#allocation3 + $0x8] sm:$0xff] %v478_v38  ;;  %v616_v39 = vpop.f32.mrb[4].mxu1 }
 0x1e2   :  { %v439_v40 = vadd.f32 %v616_v39, %v541_v26  ;;  %v430_v41 = vpop.f32.mrb[5].mxu1 }
 0x1e3   :  { %v431_v42 = vadd.f32 %v541_v26, %v430_v41  ;;  %v617_v43 = vpop.f32.mrb[6].mxu1 }
 0x1e4   :  { %v483_v44 = vmax.f32 %v439_v40, 0.0  ;;  %v442_v45 = vadd.f32 %v617_v43, %v541_v26  ;;  %v433_v46 = vpop.f32.mrb[7].mxu1 }
 0x1e5   :  { %v481_v47 = vmax.f32 %v431_v42, 0.0  ;;  %v434_v48 = vadd.f32 %v541_v26, %v433_v46 }
 0x1e6   :  { %499 = vst [vmem:[#allocation3 + $0x30] sm:$0xff] %v483_v44  ;;  %v484_v49 = vmax.f32 %v442_v45, 0.0 }
 0x1e7   :  { %497 = vst [vmem:[#allocation3 + $0x20] sm:$0xff] %v481_v47  ;;  %v482_v50 = vmax.f32 %v434_v48, 0.0 }
 0x1e8   :  { %500 = vst [vmem:[#allocation3 + $0x38] sm:$0xff] %v484_v49 }
 0x1e9   :  { %498 = vst [vmem:[#allocation3 + $0x28] sm:$0xff] %v482_v50  ;;  %v620_v51 = vpop.f32.mrb[8].mxu1 }
 0x1ea   :  { %v455_v52 = vadd.f32 %v620_v51, %v541_v26  ;;  %v446_v53 = vpop.f32.mrb[9].mxu1 }
 0x1eb   :  { %v447_v54 = vadd.f32 %v541_v26, %v446_v53  ;;  %v621_v55 = vpop.f32.mrb[10].mxu1 }
 0x1ec   :  { %v487_v56 = vmax.f32 %v455_v52, 0.0  ;;  %v458_v57 = vadd.f32 %v621_v55, %v541_v26  ;;  %v449_v58 = vpop.f32.mrb[11].mxu1 }
 0x1ed   :  { %v485_v59 = vmax.f32 %v447_v54, 0.0  ;;  %v450_v60 = vadd.f32 %v541_v26, %v449_v58 }
 0x1ee   :  { %503 = vst [vmem:[#allocation3 + $0x50] sm:$0xff] %v487_v56  ;;  %v488_v61 = vmax.f32 %v458_v57, 0.0 }
 0x1ef   :  { %501 = vst [vmem:[#allocation3 + $0x40] sm:$0xff] %v485_v59  ;;  %v486_v62 = vmax.f32 %v450_v60, 0.0 }
 0x1f0   :  { %504 = vst [vmem:[#allocation3 + $0x58] sm:$0xff] %v488_v61 }
 0x1f1   :  { %502 = vst [vmem:[#allocation3 + $0x48] sm:$0xff] %v486_v62  ;;  %v624_v63 = vpop.f32.mrb[12].mxu1 }
 0x1f2   :  { %v471_v0 = vadd.f32 %v624_v63, %v541_v26  ;;  %v462_v1 = vpop.f32.mrb[13].mxu1 }
 0x1f3   :  { %v463_v2 = vadd.f32 %v541_v26, %v462_v1  ;;  %v625_v3 = vpop.f32.mrb[14].mxu1 }
 0x1f4   :  { %v491_v4 = vmax.f32 %v471_v0, 0.0  ;;  %v474_v5 = vadd.f32 %v625_v3, %v541_v26  ;;  %v465_v6 = vpop.f32.mrb[15].mxu1 }
 0x1f5   :  { %v489_v7 = vmax.f32 %v463_v2, 0.0  ;;  %v466_v8 = vadd.f32 %v541_v26, %v465_v6 }
 0x1f6   :  { %507 = vst [vmem:[#allocation3 + $0x70] sm:$0xff] %v491_v4  ;;  %v492_v9 = vmax.f32 %v474_v5, 0.0 }
 0x1f7   :  { %505 = vst [vmem:[#allocation3 + $0x60] sm:$0xff] %v489_v7  ;;  %v490_v10 = vmax.f32 %v466_v8, 0.0 }
 0x1f8   :  { %508 = vst [vmem:[#allocation3 + $0x78] sm:$0xff] %v492_v9 }
 0x1f9   :  { %506 = vst [vmem:[#allocation3 + $0x68] sm:$0xff] %v490_v10 }
 0x1fa   :  { %658 = shalt.err (!%p655_p4)
}
 0x1fb   :  { %s659_s26 = scalar_lea.hbm %s810_s4, 2048 }
 0x1fc   :  { %p660_p5 = scmp.ne.s32.totalorder %s810_s4, %s659_s26  ;;  %p663_p6 = scmp.lt.u32.totalorder %s659_s26, %s810_s4 }
 0x1fe   :  { %p665_p7 = pnand %p663_p6, %p660_p5 }
 0x200   :  { %668 = shalt.err (!%p665_p7)
}
 0x201   :  { %s673_s5 = smov 128   ;;  %s674_s6 = smov 8  }
 0x202   :  { %520 = dma.vmem_to_hbm [thread:$0]  %s515_s22, 2048, %s810_s4, [#allocation4], %s673_s5, %s673_s5, %s674_s6  }
 0x203   :  { %669 = dma.done.wait [#allocation4], 2048  }
 0x204   :  { %670 = vsyncadd [#allocation4], 4294965248 }
 0x205   :  { %524 = vsyncpa [#allocation4], 1 }

</bundles_post_ra>
